<compile_context>
chip_gen: v7x
topology: tpu7x:2x2x1
jax: 0.10.0
libtpu: 0.0.40
codegen_flags: <defaults>
</compile_context>

<pallas_src>
import functools

import jax
import jax.numpy as jnp
from jax import lax
from jax.experimental import pallas as pl
from jax.experimental.pallas import tpu as pltpu

LANES = 128
_NUM_CORE_SPLITS = 2  # leading "parallel" grid axis; real parallelism on v7x only


def _ceil_div(a: int, b: int) -> int:
    return -(-a // b)


def _row_align(dtype) -> int:
    # Sublane packing: 8 rows for 4-byte, 16 for 2-byte, 32 for 1-byte dtypes.
    return max(8, 32 // max(1, jnp.dtype(dtype).itemsize))


def _vmem_capacity_bytes(default: int = 64 * 1024 * 1024) -> int:
    try:
        return int(getattr(pltpu.get_tpu_info(), "vmem_capacity_bytes", default))
    except Exception:
        return default


def _tversky_from_sums(tp, sx, st, alpha, beta, smooth):
    fp = sx - tp                    # sum((1 - t) * x)
    fn = st - tp                    # sum(t * (1 - x))
    tversky = (tp + smooth) / (tp + alpha * fp + beta * fn + smooth)
    return 1.0 - tversky


def _sums_jax(x, t):
    xf = x.astype(jnp.float32)
    tf = t.astype(jnp.float32)
    return jnp.sum(xf * tf), jnp.sum(xf), jnp.sum(tf)


def _tversky_partials_kernel(x_ref, t_ref, tp_ref, sx_ref, st_ref, *,
                             tile_rows: int, rows: int, steps_total: int,
                             steps_per_core: int):
    c = pl.program_id(0)            # core split ("parallel")
    i = pl.program_id(1)            # row-tile step within the split ("arbitrary")

    @pl.when(i == 0)
    def _():
        tp_ref[...] = jnp.zeros_like(tp_ref)
        sx_ref[...] = jnp.zeros_like(sx_ref)
        st_ref[...] = jnp.zeros_like(st_ref)

    # DMA stays in the input dtype (bf16/int8 welcome); math in f32.
    x = x_ref[...].astype(jnp.float32)        # (tile_rows, LANES)
    t = t_ref[...].astype(jnp.float32)

    def acc(ref, vals):
        # vreg-wise accumulation into an (8, LANES) slab; the 8->1 sublane
        # reduce is deferred to the JAX epilogue (keeps the hot loop pure VALU).
        if tile_rows % 8 == 0:
            ref[0] += vals.reshape(tile_rows // 8, 8, LANES).sum(axis=0)
        else:  # tiny full-dim tile whose row count is not a multiple of 8
            ref[0, 0:1, :] += jnp.sum(vals, axis=0, keepdims=True)

    def accumulate(xv, tv):
        acc(tp_ref, xv * tv)        # sum(x*t) per lane
        acc(sx_ref, xv)             # sum(x)   per lane
        acc(st_ref, tv)             # sum(t)   per lane

    logical_step = c * steps_per_core + i
    # Only the (globally) last logical tile can be ragged or a clamped
    # duplicate; everything else takes the unmasked fast path.
    is_edge = logical_step >= (steps_total - 1)

    @pl.when(jnp.logical_not(is_edge))
    def _():
        accumulate(x, t)

    @pl.when(is_edge)
    def _():
        row0 = logical_step * tile_rows
        ridx = lax.broadcasted_iota(jnp.int32, (tile_rows, LANES), 0)
        valid = (row0 + ridx) < rows
        accumulate(jnp.where(valid, x, 0.0), jnp.where(valid, t, 0.0))


@functools.partial(jax.jit,
                   static_argnames=("alpha", "beta", "smooth", "allow_jax_fallback"))
def tversky_loss_pallas(inputs, targets, alpha: float = 0.5, beta: float = 0.5,
                        smooth: float = 1.0, allow_jax_fallback: bool = True):
    """Tversky loss over flattened inputs/targets (matches the PyTorch module)."""
    x = inputs.reshape(-1)
    t = targets.reshape(-1)
    total = x.shape[0]

    isx = jnp.dtype(x.dtype).itemsize
    ist = jnp.dtype(t.dtype).itemsize

    aligned = (total // LANES) * LANES
    # Tiny inputs: the pallas_call fixed launch cost dominates -> plain XLA.
    if aligned == 0 or (allow_jax_fallback and total * (isx + ist) < (1 << 20)):
        return _tversky_from_sums(*_sums_jax(x, t), alpha, beta, smooth)

    rows = aligned // LANES
    tail = total - aligned

    # ---- tile sizing: bytes-based, dtype-aware, generation-aware -----------
    row_align = max(_row_align(x.dtype), _row_align(t.dtype))
    vmem_cap = _vmem_capacity_bytes()
    # Double-buffered input-window budget with headroom below physical VMEM
    # (v7x 64 MiB -> ~21 MiB budget; v5e/v6e 128 MiB -> 32 MiB budget).
    pipeline_budget = min(32 << 20, max(8 << 20, vmem_cap // 3))
    vmem_limit = int(min(vmem_cap - (8 << 20), pipeline_budget + (8 << 20)))

    bytes_per_row = LANES * (isx + ist)
    budget_rows = pipeline_budget // (bytes_per_row * 2)        # 2 pipeline buffers
    budget_rows = max(row_align, (budget_rows // row_align) * row_align)
    tile_rows = min(int(budget_rows), rows)   # == rows -> full-dim block (exempt)

    steps_total = _ceil_div(rows, tile_rows)
    steps_per_core = _ceil_div(steps_total, _NUM_CORE_SPLITS)
    grid = (_NUM_CORE_SPLITS, steps_per_core)

    last_block = steps_total - 1
    if _NUM_CORE_SPLITS * steps_per_core == steps_total:
        def in_index(c, i):
            return (c * steps_per_core + i, 0)
    else:
        # Clamp over-steps to the last real block; their contribution is fully
        # masked out in-kernel, so the duplicated (in-bounds) read is harmless.
        def in_index(c, i):
            return (jnp.minimum(c * steps_per_core + i, last_block), 0)

    # Prefix slice + reshape: a free bitcast whenever tail == 0 (the common
    # case); only truly ragged totals pay for the slice.
    x2 = x[:aligned].reshape(rows, LANES)
    t2 = t[:aligned].reshape(rows, LANES)

    kernel = functools.partial(_tversky_partials_kernel, tile_rows=tile_rows,
                               rows=rows, steps_total=steps_total,
                               steps_per_core=steps_per_core)

    part_shape = jax.ShapeDtypeStruct((_NUM_CORE_SPLITS, 8, LANES), jnp.float32)
    out_spec = pl.BlockSpec((1, 8, LANES), lambda c, i: (c, 0, 0))

    tp_p, sx_p, st_p = pl.pallas_call(
        kernel,
        out_shape=(part_shape, part_shape, part_shape),
        grid_spec=pltpu.PrefetchScalarGridSpec(
            num_scalar_prefetch=0,
            grid=grid,
            in_specs=[
                pl.BlockSpec((tile_rows, LANES), in_index),
                pl.BlockSpec((tile_rows, LANES), in_index),
            ],
            out_specs=[out_spec, out_spec, out_spec],
        ),
        compiler_params=pltpu.CompilerParams(
            dimension_semantics=("parallel", "arbitrary"),
            vmem_limit_bytes=vmem_limit),
    )(x2, t2)

    tp = jnp.sum(tp_p)
    sx = jnp.sum(sx_p)
    st = jnp.sum(st_p)

    if tail:  # < 128 leftover elements folded in on the JAX side
        xt = x[aligned:].astype(jnp.float32)
        tt = t[aligned:].astype(jnp.float32)
        tp = tp + jnp.sum(xt * tt)
        sx = sx + jnp.sum(xt)
        st = st + jnp.sum(tt)

    return _tversky_from_sums(tp, sx, st, alpha, beta, smooth)


def tversky_loss_ref(inputs, targets, alpha: float = 0.5, beta: float = 0.5,
                     smooth: float = 1.0):
    """Pure-JAX reference matching TverskyLoss.forward exactly."""
    x = inputs.reshape(-1).astype(jnp.float32)
    t = targets.reshape(-1).astype(jnp.float32)
    tp = jnp.sum(x * t)
    fp = jnp.sum((1.0 - t) * x)
    fn = jnp.sum(t * (1.0 - x))
    return 1.0 - (tp + smooth) / (tp + alpha * fp + beta * fn + smooth)


if __name__ == "__main__":
    key = jax.random.PRNGKey(0)
    k1, k2 = jax.random.split(key)

    N, C, H, W = 2, 4, 16, 16
    # Typical usage: predicted probabilities vs. binary mask (module applies no
    # sigmoid itself, so feed already-squashed inputs).
    inputs = jax.nn.sigmoid(jax.random.normal(k1, (N, C, H, W), dtype=jnp.float32))
    targets = (jax.random.uniform(k2, (N, C, H, W)) > 0.5).astype(jnp.float32)

    # allow_jax_fallback=False forces the Pallas kernel even at this demo size.
    loss = tversky_loss_pallas(inputs, targets, alpha=0.5, beta=0.5, smooth=1.0,
                               allow_jax_fallback=False)
    loss = jax.block_until_ready(loss)

    ref = tversky_loss_ref(inputs, targets, alpha=0.5, beta=0.5, smooth=1.0)
    assert jnp.allclose(loss, ref, rtol=1e-5, atol=1e-5), (loss, ref)

    print("KERNEL_OK")
</pallas_src>

<mosaic_0001>
module attributes {stable_mosaic.version = 11 : i64} {
  func.func @_tversky_partials_kernel(%arg0: i32, %arg1: i32, %arg2: memref<16x128xf32, #tpu.memory_space<vmem>>, %arg3: memref<16x128xf32, #tpu.memory_space<vmem>>, %arg4: memref<1x8x128xf32, #tpu.memory_space<vmem>>, %arg5: memref<1x8x128xf32, #tpu.memory_space<vmem>>, %arg6: memref<1x8x128xf32, #tpu.memory_space<vmem>>) attributes {dimension_semantics = [#tpu.dimension_semantics<parallel>, #tpu.dimension_semantics<arbitrary>], iteration_bounds = array<i64: 2, 1>, scalar_prefetch = 0 : i64, scratch_operands = 0 : i64, tpu.core_type = #tpu.core_type<tc>, window_params = [{transform_indices = @transform_0, window_bounds = array<i64: 16, 128>}, {transform_indices = @transform_1, window_bounds = array<i64: 16, 128>}, {transform_indices = @transform_2, window_bounds = array<i64: 1, 8, 128>}, {transform_indices = @transform_3, window_bounds = array<i64: 1, 8, 128>}, {transform_indices = @transform_4, window_bounds = array<i64: 1, 8, 128>}]} {
    %c0_i32 = arith.constant 0 : i32
    %0 = arith.cmpi eq, %arg1, %c0_i32 : i32
    %1 = arith.extui %0 : i1 to i32
    %c0_i32_0 = arith.constant 0 : i32
    %2 = arith.cmpi ne, %1, %c0_i32_0 : i32
    scf.if %2 {
      %cst = arith.constant 0.000000e+00 : f32
      %13 = vector.broadcast %cst : f32 to vector<1x8x128xf32>
      %c0_7 = arith.constant 0 : index
      %c0_8 = arith.constant 0 : index
      %c0_9 = arith.constant 0 : index
      %14 = vector.load %arg4[%c0_7, %c0_8, %c0_9] : memref<1x8x128xf32, #tpu.memory_space<vmem>>, vector<1x8x128xf32>
      tpu.vector_store %arg4[%c0_7, %c0_8, %c0_9], %13 {strides = array<i32>} : memref<1x8x128xf32, #tpu.memory_space<vmem>>, vector<1x8x128xf32>,
      %cst_10 = arith.constant 0.000000e+00 : f32
      %15 = vector.broadcast %cst_10 : f32 to vector<1x8x128xf32>
      %c0_11 = arith.constant 0 : index
      %c0_12 = arith.constant 0 : index
      %c0_13 = arith.constant 0 : index
      %16 = vector.load %arg5[%c0_11, %c0_12, %c0_13] : memref<1x8x128xf32, #tpu.memory_space<vmem>>, vector<1x8x128xf32>
      tpu.vector_store %arg5[%c0_11, %c0_12, %c0_13], %15 {strides = array<i32>} : memref<1x8x128xf32, #tpu.memory_space<vmem>>, vector<1x8x128xf32>,
      %cst_14 = arith.constant 0.000000e+00 : f32
      %17 = vector.broadcast %cst_14 : f32 to vector<1x8x128xf32>
      %c0_15 = arith.constant 0 : index
      %c0_16 = arith.constant 0 : index
      %c0_17 = arith.constant 0 : index
      %18 = vector.load %arg6[%c0_15, %c0_16, %c0_17] : memref<1x8x128xf32, #tpu.memory_space<vmem>>, vector<1x8x128xf32>
      tpu.vector_store %arg6[%c0_15, %c0_16, %c0_17], %17 {strides = array<i32>} : memref<1x8x128xf32, #tpu.memory_space<vmem>>, vector<1x8x128xf32>,
    } else {
    }
    %c0 = arith.constant 0 : index
    %c0_1 = arith.constant 0 : index
    %3 = vector.load %arg2[%c0, %c0_1] : memref<16x128xf32, #tpu.memory_space<vmem>>, vector<16x128xf32>
    %c0_2 = arith.constant 0 : index
    %c0_3 = arith.constant 0 : index
    %4 = vector.load %arg3[%c0_2, %c0_3] : memref<16x128xf32, #tpu.memory_space<vmem>>, vector<16x128xf32>
    %c1_i32 = arith.constant 1 : i32
    %5 = arith.muli %arg0, %c1_i32 : i32
    %6 = arith.addi %5, %arg1 : i32
    %c0_i32_4 = arith.constant 0 : i32
    %7 = arith.cmpi sge, %6, %c0_i32_4 : i32
    %true = arith.constant true
    %8 = arith.xori %7, %true : i1
    %9 = arith.extui %8 : i1 to i32
    %c0_i32_5 = arith.constant 0 : i32
    %10 = arith.cmpi ne, %9, %c0_i32_5 : i32
    scf.if %10 {
      %13 = arith.mulf %3, %4 : vector<16x128xf32>
      %c0_7 = arith.constant 0 : index
      %c0_8 = arith.constant 0 : index
      %c0_9 = arith.constant 0 : index
      %14 = vector.load %arg4[%c0_7, %c0_8, %c0_9] : memref<1x8x128xf32, #tpu.memory_space<vmem>>, vector<1x8x128xf32>
      %15 = vector.shape_cast %14 : vector<1x8x128xf32> to vector<8x128xf32>
      %16 = vector.shape_cast %13 : vector<16x128xf32> to vector<2x8x128xf32>
      %cst = arith.constant dense<0.000000e+00> : vector<8x128xf32>
      %17 = vector.multi_reduction <add>, %16, %cst [0] : vector<2x8x128xf32> to vector<8x128xf32>
      %18 = arith.addf %15, %17 : vector<8x128xf32>
      %c0_10 = arith.constant 0 : index
      %c0_11 = arith.constant 0 : index
      %c0_12 = arith.constant 0 : index
      %19 = vector.load %arg4[%c0_10, %c0_11, %c0_12] : memref<1x8x128xf32, #tpu.memory_space<vmem>>, vector<1x8x128xf32>
      %20 = vector.shape_cast %19 : vector<1x8x128xf32> to vector<8x128xf32>
      %21 = vector.shape_cast %18 : vector<8x128xf32> to vector<1x8x128xf32>
      tpu.vector_store %arg4[%c0_10, %c0_11, %c0_12], %21 {strides = array<i32>} : memref<1x8x128xf32, #tpu.memory_space<vmem>>, vector<1x8x128xf32>,
      %c0_13 = arith.constant 0 : index
      %c0_14 = arith.constant 0 : index
      %c0_15 = arith.constant 0 : index
      %22 = vector.load %arg5[%c0_13, %c0_14, %c0_15] : memref<1x8x128xf32, #tpu.memory_space<vmem>>, vector<1x8x128xf32>
      %23 = vector.shape_cast %22 : vector<1x8x128xf32> to vector<8x128xf32>
      %24 = vector.shape_cast %3 : vector<16x128xf32> to vector<2x8x128xf32>
      %cst_16 = arith.constant dense<0.000000e+00> : vector<8x128xf32>
      %25 = vector.multi_reduction <add>, %24, %cst_16 [0] : vector<2x8x128xf32> to vector<8x128xf32>
      %26 = arith.addf %23, %25 : vector<8x128xf32>
      %c0_17 = arith.constant 0 : index
      %c0_18 = arith.constant 0 : index
      %c0_19 = arith.constant 0 : index
      %27 = vector.load %arg5[%c0_17, %c0_18, %c0_19] : memref<1x8x128xf32, #tpu.memory_space<vmem>>, vector<1x8x128xf32>
      %28 = vector.shape_cast %27 : vector<1x8x128xf32> to vector<8x128xf32>
      %29 = vector.shape_cast %26 : vector<8x128xf32> to vector<1x8x128xf32>
      tpu.vector_store %arg5[%c0_17, %c0_18, %c0_19], %29 {strides = array<i32>} : memref<1x8x128xf32, #tpu.memory_space<vmem>>, vector<1x8x128xf32>,
      %c0_20 = arith.constant 0 : index
      %c0_21 = arith.constant 0 : index
      %c0_22 = arith.constant 0 : index
      %30 = vector.load %arg6[%c0_20, %c0_21, %c0_22] : memref<1x8x128xf32, #tpu.memory_space<vmem>>, vector<1x8x128xf32>
      %31 = vector.shape_cast %30 : vector<1x8x128xf32> to vector<8x128xf32>
      %32 = vector.shape_cast %4 : vector<16x128xf32> to vector<2x8x128xf32>
      %cst_23 = arith.constant dense<0.000000e+00> : vector<8x128xf32>
      %33 = vector.multi_reduction <add>, %32, %cst_23 [0] : vector<2x8x128xf32> to vector<8x128xf32>
      %34 = arith.addf %31, %33 : vector<8x128xf32>
      %c0_24 = arith.constant 0 : index
      %c0_25 = arith.constant 0 : index
      %c0_26 = arith.constant 0 : index
      %35 = vector.load %arg6[%c0_24, %c0_25, %c0_26] : memref<1x8x128xf32, #tpu.memory_space<vmem>>, vector<1x8x128xf32>
      %36 = vector.shape_cast %35 : vector<1x8x128xf32> to vector<8x128xf32>
      %37 = vector.shape_cast %34 : vector<8x128xf32> to vector<1x8x128xf32>
      tpu.vector_store %arg6[%c0_24, %c0_25, %c0_26], %37 {strides = array<i32>} : memref<1x8x128xf32, #tpu.memory_space<vmem>>, vector<1x8x128xf32>,
    } else {
    }
    %11 = arith.extui %7 : i1 to i32
    %c0_i32_6 = arith.constant 0 : i32
    %12 = arith.cmpi ne, %11, %c0_i32_6 : i32
    scf.if %12 {
      %c16_i32 = arith.constant 16 : i32
      %13 = arith.muli %6, %c16_i32 : i32
      %14 = tpu.iota {dimensions = array<i32: 0>} : vector<16x128xi32>
      %15 = vector.broadcast %13 : i32 to vector<16x128xi32>
      %16 = arith.addi %15, %14 : vector<16x128xi32>
      %c16_i32_7 = arith.constant 16 : i32
      %17 = vector.broadcast %c16_i32_7 : i32 to vector<16x128xi32>
      %18 = arith.cmpi slt, %16, %17 : vector<16x128xi32>
      %cst = arith.constant 0.000000e+00 : f32
      %19 = vector.broadcast %cst : f32 to vector<16x128xf32>
      %20 = arith.select %18, %3, %19 : vector<16x128xi1>, vector<16x128xf32>
      %cst_8 = arith.constant 0.000000e+00 : f32
      %21 = vector.broadcast %cst_8 : f32 to vector<16x128xf32>
      %22 = arith.select %18, %4, %21 : vector<16x128xi1>, vector<16x128xf32>
      %23 = arith.mulf %20, %22 : vector<16x128xf32>
      %c0_9 = arith.constant 0 : index
      %c0_10 = arith.constant 0 : index
      %c0_11 = arith.constant 0 : index
      %24 = vector.load %arg4[%c0_9, %c0_10, %c0_11] : memref<1x8x128xf32, #tpu.memory_space<vmem>>, vector<1x8x128xf32>
      %25 = vector.shape_cast %24 : vector<1x8x128xf32> to vector<8x128xf32>
      %26 = vector.shape_cast %23 : vector<16x128xf32> to vector<2x8x128xf32>
      %cst_12 = arith.constant dense<0.000000e+00> : vector<8x128xf32>
      %27 = vector.multi_reduction <add>, %26, %cst_12 [0] : vector<2x8x128xf32> to vector<8x128xf32>
      %28 = arith.addf %25, %27 : vector<8x128xf32>
      %c0_13 = arith.constant 0 : index
      %c0_14 = arith.constant 0 : index
      %c0_15 = arith.constant 0 : index
      %29 = vector.load %arg4[%c0_13, %c0_14, %c0_15] : memref<1x8x128xf32, #tpu.memory_space<vmem>>, vector<1x8x128xf32>
      %30 = vector.shape_cast %29 : vector<1x8x128xf32> to vector<8x128xf32>
      %31 = vector.shape_cast %28 : vector<8x128xf32> to vector<1x8x128xf32>
      tpu.vector_store %arg4[%c0_13, %c0_14, %c0_15], %31 {strides = array<i32>} : memref<1x8x128xf32, #tpu.memory_space<vmem>>, vector<1x8x128xf32>,
      %c0_16 = arith.constant 0 : index
      %c0_17 = arith.constant 0 : index
      %c0_18 = arith.constant 0 : index
      %32 = vector.load %arg5[%c0_16, %c0_17, %c0_18] : memref<1x8x128xf32, #tpu.memory_space<vmem>>, vector<1x8x128xf32>
      %33 = vector.shape_cast %32 : vector<1x8x128xf32> to vector<8x128xf32>
      %34 = vector.shape_cast %20 : vector<16x128xf32> to vector<2x8x128xf32>
      %cst_19 = arith.constant dense<0.000000e+00> : vector<8x128xf32>
      %35 = vector.multi_reduction <add>, %34, %cst_19 [0] : vector<2x8x128xf32> to vector<8x128xf32>
      %36 = arith.addf %33, %35 : vector<8x128xf32>
      %c0_20 = arith.constant 0 : index
      %c0_21 = arith.constant 0 : index
      %c0_22 = arith.constant 0 : index
      %37 = vector.load %arg5[%c0_20, %c0_21, %c0_22] : memref<1x8x128xf32, #tpu.memory_space<vmem>>, vector<1x8x128xf32>
      %38 = vector.shape_cast %37 : vector<1x8x128xf32> to vector<8x128xf32>
      %39 = vector.shape_cast %36 : vector<8x128xf32> to vector<1x8x128xf32>
      tpu.vector_store %arg5[%c0_20, %c0_21, %c0_22], %39 {strides = array<i32>} : memref<1x8x128xf32, #tpu.memory_space<vmem>>, vector<1x8x128xf32>,
      %c0_23 = arith.constant 0 : index
      %c0_24 = arith.constant 0 : index
      %c0_25 = arith.constant 0 : index
      %40 = vector.load %arg6[%c0_23, %c0_24, %c0_25] : memref<1x8x128xf32, #tpu.memory_space<vmem>>, vector<1x8x128xf32>
      %41 = vector.shape_cast %40 : vector<1x8x128xf32> to vector<8x128xf32>
      %42 = vector.shape_cast %22 : vector<16x128xf32> to vector<2x8x128xf32>
      %cst_26 = arith.constant dense<0.000000e+00> : vector<8x128xf32>
      %43 = vector.multi_reduction <add>, %42, %cst_26 [0] : vector<2x8x128xf32> to vector<8x128xf32>
      %44 = arith.addf %41, %43 : vector<8x128xf32>
      %c0_27 = arith.constant 0 : index
      %c0_28 = arith.constant 0 : index
      %c0_29 = arith.constant 0 : index
      %45 = vector.load %arg6[%c0_27, %c0_28, %c0_29] : memref<1x8x128xf32, #tpu.memory_space<vmem>>, vector<1x8x128xf32>
      %46 = vector.shape_cast %45 : vector<1x8x128xf32> to vector<8x128xf32>
      %47 = vector.shape_cast %44 : vector<8x128xf32> to vector<1x8x128xf32>
      tpu.vector_store %arg6[%c0_27, %c0_28, %c0_29], %47 {strides = array<i32>} : memref<1x8x128xf32, #tpu.memory_space<vmem>>, vector<1x8x128xf32>,
    } else {
    }
    return
  }
  func.func @transform_0(%arg0: i32, %arg1: i32) -> (i32, i32) {
    %c1_i32 = arith.constant 1 : i32
    %0 = arith.muli %arg0, %c1_i32 : i32
    %1 = arith.addi %0, %arg1 : i32
    %c0_i32 = arith.constant 0 : i32
    %2 = arith.minsi %1, %c0_i32 : i32
    %c0_i32_0 = arith.constant 0 : i32
    %c0_i32_1 = arith.constant 0 : i32
    return %2, %c0_i32_0 : i32, i32
  }
  func.func @transform_1(%arg0: i32, %arg1: i32) -> (i32, i32) {
    %c1_i32 = arith.constant 1 : i32
    %0 = arith.muli %arg0, %c1_i32 : i32
    %1 = arith.addi %0, %arg1 : i32
    %c0_i32 = arith.constant 0 : i32
    %2 = arith.minsi %1, %c0_i32 : i32
    %c0_i32_0 = arith.constant 0 : i32
    %c0_i32_1 = arith.constant 0 : i32
    return %2, %c0_i32_0 : i32, i32
  }
  func.func @transform_2(%arg0: i32, %arg1: i32) -> (i32, i32, i32) {
    %c0_i32 = arith.constant 0 : i32
    %c0_i32_0 = arith.constant 0 : i32
    %c0_i32_1 = arith.constant 0 : i32
    return %arg0, %c0_i32, %c0_i32_0 : i32, i32, i32
  }
  func.func @transform_3(%arg0: i32, %arg1: i32) -> (i32, i32, i32) {
    %c0_i32 = arith.constant 0 : i32
    %c0_i32_0 = arith.constant 0 : i32
    %c0_i32_1 = arith.constant 0 : i32
    return %arg0, %c0_i32, %c0_i32_0 : i32, i32, i32
  }
  func.func @transform_4(%arg0: i32, %arg1: i32) -> (i32, i32, i32) {
    %c0_i32 = arith.constant 0 : i32
    %c0_i32_0 = arith.constant 0 : i32
    %c0_i32_1 = arith.constant 0 : i32
    return %arg0, %c0_i32, %c0_i32_0 : i32, i32, i32
  }
}

</mosaic_0001>

<bundles_post_ra>
// kernel: tversky_loss_pallas.1
= control target key start
LH: loop header
LB: loop body
LE: loop exit
PB: predicated region body
PF: predicated region fallthrough
CT: control target
= control target key end

     0   :  { %s583_s15 = smov 0   ;;  %s585_s16 = smov 0   ;;  %s658_s0 = inlined_call_operand.vmem [shape: f32[16,128], index: 0, kind: input, shape index: {}]   ;;  %s659_s1 = inlined_call_operand.vmem [shape: f32[16,128], index: 1, kind: input, shape index: {}]   ;;  %s660_s2 = inlined_call_operand.vmem [shape: f32[2,8,128], index: 2, kind: output, shape index: {0}]   ;;  %s661_s3 = inlined_call_operand.vmem [shape: f32[2,8,128], index: 3, kind: output, shape index: {1}]   ;;  %s662_s4 = inlined_call_operand.vmem [shape: f32[2,8,128], index: 4, kind: output, shape index: {2}]  }
   0x1   :  { %s587_s17 = smov 0  }
   0x2 LB: > { %s27_s18 = sadd.s32 1, %s551_s16  ;;  %p495_p0 = scmp.ge.s32.totalorder %s555_s17, 1  ;;  %s555_s17 = sphi %s587_s17, %s15_s17   ;;  %s551_s16 = sphi %s585_s16, %s664_s16   ;;  %s547_s15 = sphi %s583_s15, %s663_s15  }
   0x3   : > { %p29_p1 = scmp.ge.s32.totalorder %s27_s18, 2  ;;  %p215_p2 = scmp.lt.s32.totalorder %s555_s17, 3 }
   0x5   : > { %s666_s18 = smov (%p29_p1, %s27_s18), 0  ;;  %p216_p3 = pnand %p495_p0, %p215_p2 }
   0x6   : > { %p260_p4 = scmp.lt.s32.totalorder (!%p216_p3), %s547_s15, 0  ;;  %p283_p5 = scmp.lt.s32.totalorder (!%p216_p3), %s547_s15, 1  ;;  %v557_v0 = vmov (!%p216_p3), 0.0  }
   0x7   : > { %219 = sbr.rel (%p216_p3) target bundleno = 49 (0x31), region = 28  ;;  %p503_p7 = scmp.ge.s32.totalorder (!%p216_p3), %s547_s15, 0 }
   0xe   : > { %s261_s19 = scalar_select %p260_p4, %s547_s15, 0 }
   0xf   : > { %s284_s20 = scalar_select %p283_p5, %s547_s15, 1 }
  0x10   : > { %s496_s21 = sshll.u32 %s261_s19, 1 }
  0x11   : > { %p263_p6 = scmp.lt.s32.totalorder %s496_s21, 1  ;;  %s500_s22 = sshll.u32 %s284_s20, 3 }
  0x12   : > { %s612_s25 = scalar_lea.vmem %s660_s2, %s500_s22  ;;  %s617_s28 = scalar_lea.vmem %s661_s3, %s500_s22 }
  0x13   : > { %s668_s21 = smov (!%p263_p6, %s496_s21), 1  ;;  %299 = vst [vmem:[%s612_s25] sm:$0xff] %v557_v0  ;;  %300 = vst [vmem:[%s617_s28] sm:$0xff] %v557_v0  ;;  %s624_s5 = scalar_lea.vmem %s662_s4, %s500_s22 }
  0x14   : > { %s497_s6 = sshll.u32 %s668_s21, 3  ;;  %301 = vst [vmem:[%s624_s5] sm:$0xff] %v557_v0  ;;  %311 = sbr.rel (%p503_p7) target bundleno = 32 (0x20), region = 36 }
  0x15   : > { %s266_s9 = scalar_lea.vmem %s658_s0, %s497_s6  ;;  %s278_s12 = scalar_lea.vmem %s659_s1, %s497_s6 }
  0x16   : > { %v302_v1 = vld [vmem:[%s266_s9] sm:$0xff]  ;;  %v303_v2 = vld [vmem:[%s266_s9 + $0x8] sm:$0xff] }
  0x17   : > { %v304_v3 = vld [vmem:[%s278_s12] sm:$0xff]  ;;  %v305_v4 = vld [vmem:[%s278_s12 + $0x8] sm:$0xff]  ;;  %v319_v8 = vadd.f32 (!%p503_p7), %v303_v2, %v302_v1 }
  0x18   : > { %v312_v5 = vmul.f32 (!%p503_p7), %v304_v3, %v302_v1  ;;  %v313_v6 = vmul.f32 (!%p503_p7), %v305_v4, %v303_v2  ;;  %v323_v10 = vadd.f32 (!%p503_p7), %v305_v4, %v304_v3 }
  0x1a   : > { %v318_v7 = vld [vmem:[%s617_s28] sm:$0xff] (!%p503_p7)  ;;  %v315_v12 = vadd.f32 (!%p503_p7), %v313_v6, %v312_v5 }
  0x1b   : > { %v322_v9 = vld [vmem:[%s624_s5] sm:$0xff]  ;;  %v320_v13 = vadd.f32 %v319_v8, %v318_v7 }
  0x1c   : > { %v314_v11 = vld [vmem:[%s612_s25] sm:$0xff]  ;;  %v324_v14 = vadd.f32 %v323_v10, %v322_v9 }
  0x1d   : > { %v316_v15 = vadd.f32 %v315_v12, %v314_v11  ;;  %321 = vst [vmem:[%s617_s28] sm:$0xff] %v320_v13 }
  0x1e   : > { %325 = vst [vmem:[%s624_s5] sm:$0xff] %v324_v14 }
  0x1f   : > { %317 = vst [vmem:[%s612_s25] sm:$0xff] %v316_v15 }
  0x20 PF: > { %328 = sbr.rel (%p260_p4) target bundleno = 49 (0x31), region = 40  ;;  %s505_s13 = sshll.u32 (!%p260_p4), %s547_s15, 4  ;;  %v330_v16 = vlaneseq (!%p260_p4) }
  0x21   : > { %v333_v17 = vstv (!%p260_p4), %s505_s13 }
  0x22   : > { %v331_v18 = vshrl.u32 (!%p260_p4), %v330_v16, 7 }
  0x24   : > { %v332_v19 = vadd.s32 (!%p260_p4), 8, %v331_v18  ;;  %v334_v20 = vadd.s32 (!%p260_p4), %v333_v17, %v331_v18  ;;  %v348_v27 = vld [vmem:[%s617_s28] sm:$0xff] (!%p260_p4) }
  0x25   : > { %v352_v28 = vld [vmem:[%s624_s5] sm:$0xff] (!%p260_p4) }
  0x26   : > { %v335_v21 = vadd.s32 (!%p260_p4), %v333_v17, %v332_v19  ;;  %vm336_vm0 = vcmp.lt.s32.totalorder (!%p260_p4), %v334_v20, 16  ;;  %v344_v32 = vld [vmem:[%s612_s25] sm:$0xff] (!%p260_p4) }
  0x27   : > { %v338_v22 = vsel %vm336_vm0, %v302_v1, 0.0  ;;  %v340_v23 = vsel %vm336_vm0, %v304_v3, 0.0 }
  0x28   : > { %vm337_vm1 = vcmp.lt.s32.totalorder %v335_v21, 16  ;;  %v342_v24 = vmul.f32 %v340_v23, %v338_v22 }
  0x29   : > { %v339_v25 = vsel %vm337_vm1, %v303_v2, 0.0  ;;  %v341_v26 = vsel %vm337_vm1, %v305_v4, 0.0 }
  0x2a   : > { %v343_v29 = vmul.f32 %v341_v26, %v339_v25  ;;  %v349_v30 = vadd.f32 %v339_v25, %v338_v22  ;;  %v353_v31 = vadd.f32 %v341_v26, %v340_v23 }
  0x2c   : > { %v345_v33 = vadd.f32 %v343_v29, %v342_v24  ;;  %v350_v34 = vadd.f32 %v349_v30, %v348_v27  ;;  %v354_v35 = vadd.f32 %v353_v31, %v352_v28 }
  0x2e   : > { %v346_v36 = vadd.f32 %v345_v33, %v344_v32  ;;  %351 = vst [vmem:[%s617_s28] sm:$0xff] %v350_v34  ;;  %355 = vst [vmem:[%s624_s5] sm:$0xff] %v354_v35 }
  0x30   : > { %347 = vst [vmem:[%s612_s25] sm:$0xff] %v346_v36 }
  0x31 PF: > { %s15_s17 = sadd.s32 1, %s555_s17   ;;  %s663_s15 = smov %s551_s16 }
  0x32   : > { %p12_p8 = scmp.ge.s32.totalorder %s15_s17, 4   ;;  %s664_s16 = smov %s666_s18 }
  0x34   :  { %14 = sbr.rel (!%p12_p8) target bundleno = 2 (0x2), region = 97 }

</bundles_post_ra>
